<compile_context>
chip_gen: v7x
topology: tpu7x:2x2x1
jax: 0.10.0
libtpu: 0.0.40
codegen_flags: <defaults>
</compile_context>

<pallas_src>
import jax
import jax.numpy as jnp
from jax import lax
from jax.experimental import pallas as pl
from jax.experimental.pallas import tpu as pltpu


# -----------------------------------------------------------------------------
# Fused inverted-residual forward
# -----------------------------------------------------------------------------
def inverted_residual_block(x_nchw, params, stride):
    """Fused Pallas forward of InvertedResidualBlock. x_nchw: (N, Cin, H, W)."""
    assert stride in (1, 2)
    x = x_nchw.astype(jnp.float32)
    N, Cin, H, W = x.shape
    s = stride
    has_expand = "expand" in params
    wd, bd = params["dw"]
    wpj, bpj = params["project"]
    c_hid = wd.shape[0]
    c_out = wpj.shape[0]
    residual = (s == 1) and (Cin == c_out)

    # conv geometry (kernel 3, pad 1, stride s)
    Ho = (H - 1) // s + 1
    Wo = (W - 1) // s + 1
    t = 2 // s                          # tap reach (frame units) inside a phase
    Hf, Wf = Ho + t, Wo + t             # per-phase frame dims
    nph = s * s
    Sf = Hf * Wf
    Sf_pad = -(-(Sf + t) // 128) * 128  # lane-tile aligned, >= Sf + t (slack for last tap)
    SoF = Ho * Wf                       # output frame (valid cols: 0..Wo-1)

    # ---- wrapper-side prep on the (small) block input ------------------------
    pad_b = s * Hf - H - 1              # bottom/right zero pad so every phase
    pad_r = s * Wf - W - 1              # frame is exactly (Hf, Wf)
    xp = jnp.pad(x, ((0, 0), (0, 0), (1, pad_b), (1, pad_r)))
    x_ph = jnp.stack([xp[:, :, a::s, b::s] for a in range(s) for b in range(s)],
                     axis=1)                                     # (N,nph,Cin,Hf,Wf)
    x_ph = x_ph.reshape(N, nph, Cin, Sf)
    x_ph = jnp.pad(x_ph, ((0, 0), (0, 0), (0, 0), (0, Sf_pad - Sf)))

    in_specs = [pl.BlockSpec((pl.Squeezed(), nph, Cin, Sf_pad),
                             lambda n: (n, 0, 0, 0))]
    args = [x_ph]
    scratch_shapes = []
    if has_expand:
        we, be = params["expand"]
        # Halo mask: after expand's bias + ReLU6 the zero halo would become
        # relu6(bias); one multiply restores exact zeros for the dw taps.
        m = jnp.zeros((H + 1 + pad_b, W + 1 + pad_r), jnp.float32)
        m = m.at[1:H + 1, 1:W + 1].set(1.0)
        m_ph = jnp.stack([m[a::s, b::s] for a in range(s) for b in range(s)], 0)
        m_ph = m_ph.reshape(nph, 1, Sf)
        m_ph = jnp.pad(m_ph, ((0, 0), (0, 0), (0, Sf_pad - Sf)))
        in_specs += [pl.BlockSpec((nph, 1, Sf_pad), lambda n: (0, 0, 0)),
                     pl.BlockSpec((c_hid, Cin), lambda n: (0, 0)),
                     pl.BlockSpec((c_hid, 1), lambda n: (0, 0))]
        args += [m_ph, we, be.reshape(c_hid, 1)]
        # hidden phases stay resident in VMEM (never hit HBM)
        scratch_shapes = [pltpu.VMEM((nph, c_hid, Sf_pad), jnp.float32)]
    in_specs += [pl.BlockSpec((c_hid, 9), lambda n: (0, 0)),
                 pl.BlockSpec((c_hid, 1), lambda n: (0, 0)),
                 pl.BlockSpec((c_out, c_hid), lambda n: (0, 0)),
                 pl.BlockSpec((c_out, 1), lambda n: (0, 0))]
    args += [wd.reshape(c_hid, 9), bd.reshape(c_hid, 1), wpj,
             bpj.reshape(c_out, 1)]

    def kernel(*refs):
        if has_expand:
            (x_ref, m_ref, we_ref, be_ref, wd_ref, bd_ref,
             wp_ref, bp_ref, o_ref, h_ref) = refs
            # expand: 1x1 conv (BN scale folded into weights) + bias + ReLU6,
            # per spatial phase; lane-dense (spatial on lanes) MXU matmul.
            for p in range(nph):
                h = jnp.dot(we_ref[...], x_ref[p],
                            preferred_element_type=jnp.float32)
                h_ref[p] = jnp.clip(h + be_ref[...], 0.0, 6.0) * m_ref[p]
            src = h_ref
        else:
            (x_ref, wd_ref, bd_ref, wp_ref, bp_ref, o_ref) = refs
            src = x_ref

        # depthwise 3x3 (BN folded) + ReLU6. Channel on sublanes, flattened
        # spatial frame on lanes; every tap (incl. stride-2 via the phase
        # decomposition) is a contiguous lane-offset slice -> only Ho*Wo
        # outputs are computed, no dense map + subsample.
        acc = jnp.zeros((c_hid, SoF), jnp.float32)
        for kh in range(3):
            for kw in range(3):
                ph = (kh % s) * s + (kw % s)
                off = (kh // s) * Wf + (kw // s)
                tap = src[ph, :, off:off + SoF]
                acc = acc + tap * wd_ref[:, kh * 3 + kw:kh * 3 + kw + 1]
        d = jnp.clip(acc + bd_ref[...], 0.0, 6.0)

        # project: 1x1 conv (BN folded) + bias + ReLU6, fused residual add.
        y = jnp.dot(wp_ref[...], d, preferred_element_type=jnp.float32)
        y = jnp.clip(y + bp_ref[...], 0.0, 6.0)
        if residual:
            # input already in VMEM: shift into the output frame coordinates.
            y = y + x_ref[0, :, Wf + 1:Wf + 1 + SoF]
        o_ref[...] = y

    # Explicit VMEM budget: double-buffered blocks + resident hidden/acc.
    block_bytes = 4 * (nph * Cin * Sf_pad + c_out * SoF
                       + (nph * Sf_pad if has_expand else 0)
                       + c_hid * (Cin + 9 + 2) + c_out * (c_hid + 1))
    hidden_bytes = 4 * nph * c_hid * Sf_pad if has_expand else 0
    work_bytes = 4 * (2 * c_hid * SoF + 2 * c_out * SoF)
    vmem_limit = int(min(64 * 1024 * 1024,            # v7x physical ceiling
                         max(32 * 1024 * 1024,
                             2 * block_bytes + hidden_bytes + 2 * work_bytes)))

    out = pl.pallas_call(
        kernel,
        out_shape=jax.ShapeDtypeStruct((N, c_out, SoF), jnp.float32),
        grid=(N,),
        in_specs=in_specs,
        out_specs=pl.BlockSpec((pl.Squeezed(), c_out, SoF), lambda n: (n, 0, 0)),
        scratch_shapes=scratch_shapes,
        compiler_params=pltpu.CompilerParams(
            dimension_semantics=("parallel",),
            vmem_limit_bytes=vmem_limit),
    )(*args)

    # Drop the t junk frame columns; output is already NCHW (no transposes).
    return out.reshape(N, c_out, Ho, Wf)[:, :, :, :Wo]


# -----------------------------------------------------------------------------
# Deterministic parameters: BN (inference) scale folded into conv weights.
# -----------------------------------------------------------------------------
def _bn_affine(key, c):
    k1, k2, k3, k4 = jax.random.split(key, 4)
    gamma = jax.random.uniform(k1, (c,), minval=0.5, maxval=1.5)
    beta = jax.random.normal(k2, (c,)) * 0.1
    mean = jax.random.normal(k3, (c,)) * 0.1
    var = jax.random.uniform(k4, (c,), minval=0.5, maxval=1.5)
    scale = gamma / jnp.sqrt(var + 1e-5)
    bias = beta - mean * scale
    return scale.astype(jnp.float32), bias.astype(jnp.float32)


def make_params(key, cin, cout, expansion_ratio):
    hidden = cin * expansion_ratio
    keys = jax.random.split(key, 6)
    params = {}
    if expansion_ratio != 1:
        w = jax.random.normal(keys[0], (hidden, cin)) * 0.1          # (O, I)
        s, b = _bn_affine(keys[1], hidden)
        params["expand"] = ((w * s[:, None]).astype(jnp.float32), b)
    wd = jax.random.normal(keys[2], (hidden, 3, 3)) * 0.1            # (C, kh, kw)
    s, b = _bn_affine(keys[3], hidden)
    params["dw"] = ((wd * s[:, None, None]).astype(jnp.float32), b)
    wp = jax.random.normal(keys[4], (cout, hidden)) * 0.1            # (O, I)
    s, b = _bn_affine(keys[5], cout)
    params["project"] = ((wp * s[:, None]).astype(jnp.float32), b)
    return params


# -----------------------------------------------------------------------------
# Pure-JAX reference (lax convs) for validation
# -----------------------------------------------------------------------------
def ref_forward(x_nchw, params, stride):
    dn = ("NCHW", "OIHW", "NCHW")
    x = x_nchw.astype(jnp.float32)
    cin = x.shape[1]
    y = x
    if "expand" in params:
        w, b = params["expand"]
        y = jnp.clip(
            lax.conv_general_dilated(y, w[:, :, None, None], (1, 1), "VALID",
                                     dimension_numbers=dn)
            + b[None, :, None, None], 0.0, 6.0)
    w, b = params["dw"]
    c = w.shape[0]
    y = jnp.clip(
        lax.conv_general_dilated(y, w[:, None, :, :], (stride, stride),
                                 ((1, 1), (1, 1)), dimension_numbers=dn,
                                 feature_group_count=c)
        + b[None, :, None, None], 0.0, 6.0)
    w, b = params["project"]
    cout = w.shape[0]
    out = jnp.clip(
        lax.conv_general_dilated(y, w[:, :, None, None], (1, 1), "VALID",
                                 dimension_numbers=dn)
        + b[None, :, None, None], 0.0, 6.0)
    if stride == 1 and cin == cout:
        out = out + x
    return out


# -----------------------------------------------------------------------------
if __name__ == "__main__":
    key = jax.random.PRNGKey(0)
    kx, kp1, kp2 = jax.random.split(key, 3)

    # Config 1: expansion_ratio=4, stride=1, in==out -> residual connection.
    cin, cout, exp_r, stride = 4, 4, 4, 1
    x = jax.random.normal(kx, (2, cin, 16, 16), dtype=jnp.float32)
    params = make_params(kp1, cin, cout, exp_r)
    y = inverted_residual_block(x, params, stride)
    jax.block_until_ready(y)
    y_ref = ref_forward(x, params, stride)
    assert y.shape == (2, cout, 16, 16)
    err = float(jnp.max(jnp.abs(y - y_ref)))
    assert jnp.allclose(y, y_ref, atol=1e-4, rtol=1e-4), err

    # Config 2: expansion_ratio=1 (no expand layer), stride=2, no residual.
    cin2, cout2, exp2, stride2 = 8, 16, 1, 2
    x2 = jax.random.normal(kx, (2, cin2, 16, 16), dtype=jnp.float32)
    params2 = make_params(kp2, cin2, cout2, exp2)
    y2 = inverted_residual_block(x2, params2, stride2)
    jax.block_until_ready(y2)
    y2_ref = ref_forward(x2, params2, stride2)
    assert y2.shape == (2, cout2, 8, 8)
    err2 = float(jnp.max(jnp.abs(y2 - y2_ref)))
    assert jnp.allclose(y2, y2_ref, atol=1e-4, rtol=1e-4), err2

    print("KERNEL_OK")
</pallas_src>

<mosaic_0001>
module attributes {stable_mosaic.version = 11 : i64} {
  func.func @kernel(%arg0: i32, %arg1: memref<1x1x4x384xf32, #tpu.memory_space<vmem>>, %arg2: memref<1x1x384xf32, #tpu.memory_space<vmem>>, %arg3: memref<16x4xf32, #tpu.memory_space<vmem>>, %arg4: memref<16x1xf32, #tpu.memory_space<vmem>>, %arg5: memref<16x9xf32, #tpu.memory_space<vmem>>, %arg6: memref<16x1xf32, #tpu.memory_space<vmem>>, %arg7: memref<4x16xf32, #tpu.memory_space<vmem>>, %arg8: memref<4x1xf32, #tpu.memory_space<vmem>>, %arg9: memref<1x4x288xf32, #tpu.memory_space<vmem>>, %arg10: memref<1x16x384xf32, #tpu.memory_space<vmem>>) attributes {dimension_semantics = [#tpu.dimension_semantics<parallel>], iteration_bounds = array<i64: 2>, scalar_prefetch = 0 : i64, scratch_operands = 1 : i64, tpu.core_type = #tpu.core_type<tc>, window_params = [{transform_indices = @transform_0, window_bounds = array<i64: 1, 1, 4, 384>}, {pipeline_mode = #tpu.pipeline_mode<synchronous>, transform_indices = @transform_1, window_bounds = array<i64: 1, 1, 384>}, {pipeline_mode = #tpu.pipeline_mode<synchronous>, transform_indices = @transform_2, window_bounds = array<i64: 16, 4>}, {pipeline_mode = #tpu.pipeline_mode<synchronous>, transform_indices = @transform_3, window_bounds = array<i64: 16, 1>}, {pipeline_mode = #tpu.pipeline_mode<synchronous>, transform_indices = @transform_4, window_bounds = array<i64: 16, 9>}, {pipeline_mode = #tpu.pipeline_mode<synchronous>, transform_indices = @transform_5, window_bounds = array<i64: 16, 1>}, {pipeline_mode = #tpu.pipeline_mode<synchronous>, transform_indices = @transform_6, window_bounds = array<i64: 4, 16>}, {pipeline_mode = #tpu.pipeline_mode<synchronous>, transform_indices = @transform_7, window_bounds = array<i64: 4, 1>}, {transform_indices = @transform_8, window_bounds = array<i64: 1, 4, 288>}]} {
    %c0 = arith.constant 0 : index
    %c0_0 = arith.constant 0 : index
    %0 = vector.load %arg3[%c0, %c0_0] : memref<16x4xf32, #tpu.memory_space<vmem>>, vector<16x4xf32>
    %c0_1 = arith.constant 0 : index
    %c0_2 = arith.constant 0 : index
    %c0_3 = arith.constant 0 : index
    %c0_4 = arith.constant 0 : index
    %1 = vector.load %arg1[%c0_1, %c0_2, %c0_3, %c0_4] : memref<1x1x4x384xf32, #tpu.memory_space<vmem>>, vector<1x1x4x384xf32>
    %2 = vector.shape_cast %1 : vector<1x1x4x384xf32> to vector<4x384xf32>
    %cst = arith.constant dense<0.000000e+00> : vector<16x384xf32>
    %3 = tpu.matmul %0, %2, %cst {dimension_numbers = #tpu.dot_dimension_numbers<[1], [0], [0], [1], [0, 0, 1, 1], [], []>} : vector<16x4xf32>, vector<4x384xf32>, vector<16x384xf32> -> vector<16x384xf32>
    %c0_5 = arith.constant 0 : index
    %c0_6 = arith.constant 0 : index
    %4 = vector.load %arg4[%c0_5, %c0_6] : memref<16x1xf32, #tpu.memory_space<vmem>>, vector<16x1xf32>
    %5 = vector.broadcast %4 : vector<16x1xf32> to vector<16x384xf32>
    %6 = arith.addf %3, %5 : vector<16x384xf32>
    %cst_7 = arith.constant 0.000000e+00 : f32
    %cst_8 = arith.constant 6.000000e+00 : f32
    %7 = vector.broadcast %cst_7 : f32 to vector<16x384xf32>
    %8 = arith.maximumf %7, %6 : vector<16x384xf32>
    %9 = vector.broadcast %cst_8 : f32 to vector<16x384xf32>
    %10 = arith.minimumf %9, %8 : vector<16x384xf32>
    %c0_9 = arith.constant 0 : index
    %c0_10 = arith.constant 0 : index
    %c0_11 = arith.constant 0 : index
    %11 = vector.load %arg2[%c0_9, %c0_10, %c0_11] : memref<1x1x384xf32, #tpu.memory_space<vmem>>, vector<1x1x384xf32>
    %12 = vector.shape_cast %11 : vector<1x1x384xf32> to vector<1x384xf32>
    %13 = vector.broadcast %12 : vector<1x384xf32> to vector<16x384xf32>
    %14 = arith.mulf %10, %13 : vector<16x384xf32>
    %c0_12 = arith.constant 0 : index
    %c0_13 = arith.constant 0 : index
    %c0_14 = arith.constant 0 : index
    %15 = vector.load %arg10[%c0_12, %c0_13, %c0_14] : memref<1x16x384xf32, #tpu.memory_space<vmem>>, vector<1x16x384xf32>
    %16 = vector.shape_cast %15 : vector<1x16x384xf32> to vector<16x384xf32>
    %17 = vector.shape_cast %14 : vector<16x384xf32> to vector<1x16x384xf32>
    tpu.vector_store %arg10[%c0_12, %c0_13, %c0_14], %17 {strides = array<i32>} : memref<1x16x384xf32, #tpu.memory_space<vmem>>, vector<1x16x384xf32>,
    %cst_15 = arith.constant 0.000000e+00 : f32
    %18 = vector.broadcast %cst_15 : f32 to vector<16x288xf32>
    %c0_16 = arith.constant 0 : index
    %c0_17 = arith.constant 0 : index
    %c0_18 = arith.constant 0 : index
    %19 = vector.load %arg10[%c0_16, %c0_17, %c0_18] : memref<1x16x384xf32, #tpu.memory_space<vmem>>, vector<1x16x288xf32>
    %20 = vector.shape_cast %19 : vector<1x16x288xf32> to vector<16x288xf32>
    %c0_19 = arith.constant 0 : index
    %c0_20 = arith.constant 0 : index
    %21 = vector.load %arg5[%c0_19, %c0_20] : memref<16x9xf32, #tpu.memory_space<vmem>>, vector<16x1xf32>
    %22 = vector.broadcast %21 : vector<16x1xf32> to vector<16x288xf32>
    %23 = arith.mulf %20, %22 : vector<16x288xf32>
    %24 = arith.addf %18, %23 : vector<16x288xf32>
    %c0_21 = arith.constant 0 : index
    %c0_22 = arith.constant 0 : index
    %c1 = arith.constant 1 : index
    %25 = vector.load %arg10[%c0_21, %c0_22, %c1] : memref<1x16x384xf32, #tpu.memory_space<vmem>>, vector<1x16x288xf32>
    %26 = vector.shape_cast %25 : vector<1x16x288xf32> to vector<16x288xf32>
    %c0_23 = arith.constant 0 : index
    %c1_24 = arith.constant 1 : index
    %27 = vector.load %arg5[%c0_23, %c1_24] : memref<16x9xf32, #tpu.memory_space<vmem>>, vector<16x1xf32>
    %28 = vector.broadcast %27 : vector<16x1xf32> to vector<16x288xf32>
    %29 = arith.mulf %26, %28 : vector<16x288xf32>
    %30 = arith.addf %24, %29 : vector<16x288xf32>
    %c0_25 = arith.constant 0 : index
    %c0_26 = arith.constant 0 : index
    %c2 = arith.constant 2 : index
    %31 = vector.load %arg10[%c0_25, %c0_26, %c2] : memref<1x16x384xf32, #tpu.memory_space<vmem>>, vector<1x16x288xf32>
    %32 = vector.shape_cast %31 : vector<1x16x288xf32> to vector<16x288xf32>
    %c0_27 = arith.constant 0 : index
    %c2_28 = arith.constant 2 : index
    %33 = vector.load %arg5[%c0_27, %c2_28] : memref<16x9xf32, #tpu.memory_space<vmem>>, vector<16x1xf32>
    %34 = vector.broadcast %33 : vector<16x1xf32> to vector<16x288xf32>
    %35 = arith.mulf %32, %34 : vector<16x288xf32>
    %36 = arith.addf %30, %35 : vector<16x288xf32>
    %c0_29 = arith.constant 0 : index
    %c0_30 = arith.constant 0 : index
    %c18 = arith.constant 18 : index
    %37 = vector.load %arg10[%c0_29, %c0_30, %c18] : memref<1x16x384xf32, #tpu.memory_space<vmem>>, vector<1x16x288xf32>
    %38 = vector.shape_cast %37 : vector<1x16x288xf32> to vector<16x288xf32>
    %c0_31 = arith.constant 0 : index
    %c3 = arith.constant 3 : index
    %39 = vector.load %arg5[%c0_31, %c3] : memref<16x9xf32, #tpu.memory_space<vmem>>, vector<16x1xf32>
    %40 = vector.broadcast %39 : vector<16x1xf32> to vector<16x288xf32>
    %41 = arith.mulf %38, %40 : vector<16x288xf32>
    %42 = arith.addf %36, %41 : vector<16x288xf32>
    %c0_32 = arith.constant 0 : index
    %c0_33 = arith.constant 0 : index
    %c19 = arith.constant 19 : index
    %43 = vector.load %arg10[%c0_32, %c0_33, %c19] : memref<1x16x384xf32, #tpu.memory_space<vmem>>, vector<1x16x288xf32>
    %44 = vector.shape_cast %43 : vector<1x16x288xf32> to vector<16x288xf32>
    %c0_34 = arith.constant 0 : index
    %c4 = arith.constant 4 : index
    %45 = vector.load %arg5[%c0_34, %c4] : memref<16x9xf32, #tpu.memory_space<vmem>>, vector<16x1xf32>
    %46 = vector.broadcast %45 : vector<16x1xf32> to vector<16x288xf32>
    %47 = arith.mulf %44, %46 : vector<16x288xf32>
    %48 = arith.addf %42, %47 : vector<16x288xf32>
    %c0_35 = arith.constant 0 : index
    %c0_36 = arith.constant 0 : index
    %c20 = arith.constant 20 : index
    %49 = vector.load %arg10[%c0_35, %c0_36, %c20] : memref<1x16x384xf32, #tpu.memory_space<vmem>>, vector<1x16x288xf32>
    %50 = vector.shape_cast %49 : vector<1x16x288xf32> to vector<16x288xf32>
    %c0_37 = arith.constant 0 : index
    %c5 = arith.constant 5 : index
    %51 = vector.load %arg5[%c0_37, %c5] : memref<16x9xf32, #tpu.memory_space<vmem>>, vector<16x1xf32>
    %52 = vector.broadcast %51 : vector<16x1xf32> to vector<16x288xf32>
    %53 = arith.mulf %50, %52 : vector<16x288xf32>
    %54 = arith.addf %48, %53 : vector<16x288xf32>
    %c0_38 = arith.constant 0 : index
    %c0_39 = arith.constant 0 : index
    %c36 = arith.constant 36 : index
    %55 = vector.load %arg10[%c0_38, %c0_39, %c36] : memref<1x16x384xf32, #tpu.memory_space<vmem>>, vector<1x16x288xf32>
    %56 = vector.shape_cast %55 : vector<1x16x288xf32> to vector<16x288xf32>
    %c0_40 = arith.constant 0 : index
    %c6 = arith.constant 6 : index
    %57 = vector.load %arg5[%c0_40, %c6] : memref<16x9xf32, #tpu.memory_space<vmem>>, vector<16x1xf32>
    %58 = vector.broadcast %57 : vector<16x1xf32> to vector<16x288xf32>
    %59 = arith.mulf %56, %58 : vector<16x288xf32>
    %60 = arith.addf %54, %59 : vector<16x288xf32>
    %c0_41 = arith.constant 0 : index
    %c0_42 = arith.constant 0 : index
    %c37 = arith.constant 37 : index
    %61 = vector.load %arg10[%c0_41, %c0_42, %c37] : memref<1x16x384xf32, #tpu.memory_space<vmem>>, vector<1x16x288xf32>
    %62 = vector.shape_cast %61 : vector<1x16x288xf32> to vector<16x288xf32>
    %c0_43 = arith.constant 0 : index
    %c7 = arith.constant 7 : index
    %63 = vector.load %arg5[%c0_43, %c7] : memref<16x9xf32, #tpu.memory_space<vmem>>, vector<16x1xf32>
    %64 = vector.broadcast %63 : vector<16x1xf32> to vector<16x288xf32>
    %65 = arith.mulf %62, %64 : vector<16x288xf32>
    %66 = arith.addf %60, %65 : vector<16x288xf32>
    %c0_44 = arith.constant 0 : index
    %c0_45 = arith.constant 0 : index
    %c38 = arith.constant 38 : index
    %67 = vector.load %arg10[%c0_44, %c0_45, %c38] : memref<1x16x384xf32, #tpu.memory_space<vmem>>, vector<1x16x288xf32>
    %68 = vector.shape_cast %67 : vector<1x16x288xf32> to vector<16x288xf32>
    %c0_46 = arith.constant 0 : index
    %c8 = arith.constant 8 : index
    %69 = vector.load %arg5[%c0_46, %c8] : memref<16x9xf32, #tpu.memory_space<vmem>>, vector<16x1xf32>
    %70 = vector.broadcast %69 : vector<16x1xf32> to vector<16x288xf32>
    %71 = arith.mulf %68, %70 : vector<16x288xf32>
    %72 = arith.addf %66, %71 : vector<16x288xf32>
    %c0_47 = arith.constant 0 : index
    %c0_48 = arith.constant 0 : index
    %73 = vector.load %arg6[%c0_47, %c0_48] : memref<16x1xf32, #tpu.memory_space<vmem>>, vector<16x1xf32>
    %74 = vector.broadcast %73 : vector<16x1xf32> to vector<16x288xf32>
    %75 = arith.addf %72, %74 : vector<16x288xf32>
    %cst_49 = arith.constant 0.000000e+00 : f32
    %cst_50 = arith.constant 6.000000e+00 : f32
    %76 = vector.broadcast %cst_49 : f32 to vector<16x288xf32>
    %77 = arith.maximumf %76, %75 : vector<16x288xf32>
    %78 = vector.broadcast %cst_50 : f32 to vector<16x288xf32>
    %79 = arith.minimumf %78, %77 : vector<16x288xf32>
    %c0_51 = arith.constant 0 : index
    %c0_52 = arith.constant 0 : index
    %80 = vector.load %arg7[%c0_51, %c0_52] : memref<4x16xf32, #tpu.memory_space<vmem>>, vector<4x16xf32>
    %cst_53 = arith.constant dense<0.000000e+00> : vector<4x288xf32>
    %81 = tpu.matmul %80, %79, %cst_53 {dimension_numbers = #tpu.dot_dimension_numbers<[1], [0], [0], [1], [0, 0, 1, 1], [], []>} : vector<4x16xf32>, vector<16x288xf32>, vector<4x288xf32> -> vector<4x288xf32>
    %c0_54 = arith.constant 0 : index
    %c0_55 = arith.constant 0 : index
    %82 = vector.load %arg8[%c0_54, %c0_55] : memref<4x1xf32, #tpu.memory_space<vmem>>, vector<4x1xf32>
    %83 = vector.broadcast %82 : vector<4x1xf32> to vector<4x288xf32>
    %84 = arith.addf %81, %83 : vector<4x288xf32>
    %cst_56 = arith.constant 0.000000e+00 : f32
    %cst_57 = arith.constant 6.000000e+00 : f32
    %85 = vector.broadcast %cst_56 : f32 to vector<4x288xf32>
    %86 = arith.maximumf %85, %84 : vector<4x288xf32>
    %87 = vector.broadcast %cst_57 : f32 to vector<4x288xf32>
    %88 = arith.minimumf %87, %86 : vector<4x288xf32>
    %c0_58 = arith.constant 0 : index
    %c0_59 = arith.constant 0 : index
    %c0_60 = arith.constant 0 : index
    %c19_61 = arith.constant 19 : index
    %89 = vector.load %arg1[%c0_58, %c0_59, %c0_60, %c19_61] : memref<1x1x4x384xf32, #tpu.memory_space<vmem>>, vector<1x1x4x288xf32>
    %90 = vector.shape_cast %89 : vector<1x1x4x288xf32> to vector<4x288xf32>
    %91 = arith.addf %88, %90 : vector<4x288xf32>
    %c0_62 = arith.constant 0 : index
    %c0_63 = arith.constant 0 : index
    %c0_64 = arith.constant 0 : index
    %92 = vector.load %arg9[%c0_62, %c0_63, %c0_64] : memref<1x4x288xf32, #tpu.memory_space<vmem>>, vector<1x4x288xf32>
    %93 = vector.shape_cast %92 : vector<1x4x288xf32> to vector<4x288xf32>
    %94 = vector.shape_cast %91 : vector<4x288xf32> to vector<1x4x288xf32>
    tpu.vector_store %arg9[%c0_62, %c0_63, %c0_64], %94 {strides = array<i32>} : memref<1x4x288xf32, #tpu.memory_space<vmem>>, vector<1x4x288xf32>,
    return
  }
  func.func @transform_0(%arg0: i32) -> (i32, i32, i32, i32) {
    %c0_i32 = arith.constant 0 : i32
    %c0_i32_0 = arith.constant 0 : i32
    %c0_i32_1 = arith.constant 0 : i32
    %c0_i32_2 = arith.constant 0 : i32
    return %arg0, %c0_i32, %c0_i32_0, %c0_i32_1 : i32, i32, i32, i32
  }
  func.func @transform_1(%arg0: i32) -> (i32, i32, i32) {
    %c0_i32 = arith.constant 0 : i32
    %c0_i32_0 = arith.constant 0 : i32
    %c0_i32_1 = arith.constant 0 : i32
    %c0_i32_2 = arith.constant 0 : i32
    return %c0_i32, %c0_i32_0, %c0_i32_1 : i32, i32, i32
  }
  func.func @transform_2(%arg0: i32) -> (i32, i32) {
    %c0_i32 = arith.constant 0 : i32
    %c0_i32_0 = arith.constant 0 : i32
    %c0_i32_1 = arith.constant 0 : i32
    return %c0_i32, %c0_i32_0 : i32, i32
  }
  func.func @transform_3(%arg0: i32) -> (i32, i32) {
    %c0_i32 = arith.constant 0 : i32
    %c0_i32_0 = arith.constant 0 : i32
    %c0_i32_1 = arith.constant 0 : i32
    return %c0_i32, %c0_i32_0 : i32, i32
  }
  func.func @transform_4(%arg0: i32) -> (i32, i32) {
    %c0_i32 = arith.constant 0 : i32
    %c0_i32_0 = arith.constant 0 : i32
    %c0_i32_1 = arith.constant 0 : i32
    return %c0_i32, %c0_i32_0 : i32, i32
  }
  func.func @transform_5(%arg0: i32) -> (i32, i32) {
    %c0_i32 = arith.constant 0 : i32
    %c0_i32_0 = arith.constant 0 : i32
    %c0_i32_1 = arith.constant 0 : i32
    return %c0_i32, %c0_i32_0 : i32, i32
  }
  func.func @transform_6(%arg0: i32) -> (i32, i32) {
    %c0_i32 = arith.constant 0 : i32
    %c0_i32_0 = arith.constant 0 : i32
    %c0_i32_1 = arith.constant 0 : i32
    return %c0_i32, %c0_i32_0 : i32, i32
  }
  func.func @transform_7(%arg0: i32) -> (i32, i32) {
    %c0_i32 = arith.constant 0 : i32
    %c0_i32_0 = arith.constant 0 : i32
    %c0_i32_1 = arith.constant 0 : i32
    return %c0_i32, %c0_i32_0 : i32, i32
  }
  func.func @transform_8(%arg0: i32) -> (i32, i32, i32) {
    %c0_i32 = arith.constant 0 : i32
    %c0_i32_0 = arith.constant 0 : i32
    %c0_i32_1 = arith.constant 0 : i32
    return %arg0, %c0_i32, %c0_i32_0 : i32, i32, i32
  }
}

</mosaic_0001>

<bundles_post_ra>
// kernel: tpu_custom_call.1
= control target key start
LH: loop header
LB: loop body
LE: loop exit
PB: predicated region body
PF: predicated region fallthrough
CT: control target
= control target key end

     0   :  { %13 = vsyncpa [#allocation4], 0  ;;  %s2040_s0 = inlined_call_operand.vmem [shape: f32[2,1,4,384], index: 0, kind: input, shape index: {}]   ;;  %s2041_s1 = inlined_call_operand.vmem [shape: f32[1,1,384], index: 1, kind: input, shape index: {}]   ;;  %s2042_s2 = inlined_call_operand.vmem [shape: f32[16,4], index: 2, kind: input, shape index: {}]   ;;  %s2043_s3 = inlined_call_operand.vmem [shape: f32[16,1], index: 3, kind: input, shape index: {}]   ;;  %s2044_s4 = inlined_call_operand.vmem [shape: f32[16,9], index: 4, kind: input, shape index: {}]   ;;  %s2045_s5 = inlined_call_operand.vmem [shape: f32[16,1], index: 5, kind: input, shape index: {}]   ;;  %s2046_s6 = inlined_call_operand.vmem [shape: f32[4,16], index: 6, kind: input, shape index: {}]   ;;  %s2047_s7 = inlined_call_operand.vmem [shape: f32[4,1], index: 7, kind: input, shape index: {}]   ;;  %s2048_s8 = inlined_call_operand.hbm [shape: f32[2,4,288], index: 8, kind: output, shape index: {}]  }
   0x1   :  { %15 = vsyncpa [#allocation4 + $0x1], 0  ;;  %s1490_s27 = smov 0   ;;  %s1492_s28 = smov 0  }
   0x2   :  { %s1494_s29 = smov 0   ;;  %s1496_s30 = smov 0  }
   0x3 LB: > { %s1511_s9 = sadd.s32 4294967295, %s1422_s30   ;;  %s1240_s10 = sadd.s32 4294967294, %s1422_s30   ;;  %s1422_s30 = sphi %s1496_s30, %s2054_s30   ;;  %s1418_s29 = sphi %s1494_s29, %s2053_s29   ;;  %s1414_s28 = sphi %s1492_s28, %s2052_s28   ;;  %s1410_s27 = sphi %s1490_s27, %s2051_s27  }
   0x4   : > { %s1515_s11 = sadd.s32 1, %s1422_s30   ;;  %s201_s12 = sadd.s32 1, %s1418_s29 }
   0x5   : > { %s198_s13 = ssub.s32 %s1422_s30, %s1515_s11  ;;  %p211_p0 = scmp.ne.s32.totalorder %s1418_s29, %s1414_s28 }
   0x6   : > { %p199_p1 = scmp.eq.s32.totalorder %s198_s13, 0  ;;  %p212_p2 = scmp.eq.s32.totalorder %s1511_s9, 1 }
   0x7   : > { %p217_p3 = scmp.ne.s32.totalorder %s1414_s28, %s1410_s27  ;;  %p218_p4 = scmp.eq.s32.totalorder %s1240_s10, 1 }
   0x8   : > { %s1526_s14 = scalar_select %p199_p1, %s1418_s29, %s201_s12  }
   0x9   : > { %p1528_p5 = por %p212_p2, %p211_p0  ;;  %p1532_p6 = por %p218_p4, %p217_p3 }
   0xa   : > { %p1243_p7 = scmp.ge.s32.totalorder %s1422_s30, 1  ;;  %p265_p8 = scmp.lt.s32.totalorder %s1422_s30, 3 }
   0xc   : > { %p266_p9 = pnand %p1243_p7, %p265_p8 }
   0xd   : > { %p299_p10 = scmp.lt.s32.totalorder (!%p266_p9), %s1511_s9, 1  ;;  %v304_v0 = vld [vmem:[%s2042_s2] sm:$0xff] (!%p266_p9)  ;;  %vm323_vm0 = vcmask (!%p266_p9), 31744   ;;  %v1424_v1 = vmov (!%p266_p9), 0.0   ;;  %v1425_v3 = vmov (!%p266_p9), 1   ;;  %v1426_v4 = vmov (!%p266_p9), 2  }
   0xe   : > { %269 = sbr.rel (%p266_p9) target bundleno = 713 (0x2c9), region = 52  ;;  %1265 = vmatprep.mubr.msk.f32.mxu1 (!%p266_p9), %vm323_vm0, %v304_v0  ;;  %401 = vmatprep.mubr.f32.mxu0 (!%p266_p9), %v1424_v1  ;;  %v1547_v2 = vld [vmem:[%s2044_s4] sm:$0xff] (!%p266_p9)  ;;  %v537_v5 = vld [vmem:[%s2044_s4 + $0x8] sm:$0xff] (!%p266_p9)  ;;  %vm330_vm1 = vcmask (!%p266_p9), 1043456   ;;  %v1427_v9 = vmov (!%p266_p9), 3   ;;  %v1428_v11 = vmov (!%p266_p9), 5   ;;  %v503_v35 = vlaneseq (!%p266_p9) }
   0xf   : > { %1344 = vset.pattern.permute.xlu1 (!%p266_p9), %v1425_v3  ;;  %1345 = vset.pattern.permute.xlu0 (!%p266_p9), %v1426_v4  ;;  %v305_v8 = vld [vmem:[%s2042_s2 + $0x8] sm:$0xff] (!%p266_p9)  ;;  %v1429_v12 = vmov (!%p266_p9), 6   ;;  %v1430_v13 = vmov (!%p266_p9), 4   ;;  %v1431_v14 = vmov (!%p266_p9), 8   ;;  %v308_v15 = vld [vmem:[%s2043_s3] sm:$0xff] (!%p266_p9)  ;;  %v1432_v16 = vmov (!%p266_p9), 0  }
  0x10   : > { %561 = vperm.xlu1 (!%p266_p9), %1344, %v1547_v2   ;;  %610 = vperm.xlu0 (!%p266_p9), %1345, %v1547_v2   ;;  %v309_v17 = vld [vmem:[%s2043_s3 + $0x8] sm:$0xff] (!%p266_p9)  ;;  %v952_v18 = vld [vmem:[%s2045_s5] sm:$0xff] (!%p266_p9)  ;;  %v1433_v19 = vmov (!%p266_p9), 7   ;;  %v504_v37 = vshrl.u32 (!%p266_p9), %v503_v35, 7  ;;  %s1434_s12 = smov (!%p266_p9), 127   ;;  %s1435_s13 = smov (!%p266_p9), 126  }
  0x11   : > { %v953_v20 = vld [vmem:[%s2045_s5 + $0x8] sm:$0xff] (!%p266_p9)  ;;  %v501_v42 = vld [vmem:[%s2041_s1] sm:$0x7] (!%p266_p9)  ;;  %s1436_s17 = smov (!%p266_p9), 110   ;;  %s1437_s18 = smov (!%p266_p9), 109   ;;  %vm1443_vm2 = vmmov (!%p266_p9), 0  }
  0x12   : > { %v513_v39 = vsub.s32 (!%p266_p9), 2, %v504_v37  ;;  %v505_v45 = vsub.s32 (!%p266_p9), 0, %v504_v37  ;;  %v509_v47 = vsub.s32 (!%p266_p9), 1, %v504_v37  ;;  %s1438_s19 = smov (!%p266_p9), 108   ;;  %s1439_s20 = smov (!%p266_p9), 92   ;;  %vm592_vm3 = vcmask (!%p266_p9), 1039360  }
  0x13   : > { %vm641_vm4 = vcmask (!%p266_p9), 1031168   ;;  %vm690_vm5 = vcmask (!%p266_p9), 900096   ;;  %vm739_vm6 = vcmask (!%p266_p9), 891904   ;;  %vm788_vm7 = vcmask (!%p266_p9), 883712   ;;  %s296_s26 = sand.u32 (!%p266_p9), 1, %s1414_s28  }
  0x14   : > { %565 = vperm.xlu1 (!%p266_p9), %1344, %v537_v5   ;;  %1348 = vset.pattern.permute.xlu0 (!%p266_p9), %v1427_v9  ;;  %v514_v50 = vrot.slane (!%p266_p9), %v501_v42, %v513_v39  ;;  %v506_v56 = vrot.slane (!%p266_p9), %v501_v42, %v505_v45  ;;  %v1635_v58 = vrot.slane (!%p266_p9), %v501_v42, %v509_v47  ;;  %vm989_vm8 = vcmask (!%p266_p9), 130048  }
  0x15   : > { %s300_s21 = scalar_select %p299_p10, %s1511_s9, 1  ;;  %663 = vperm.xlu0 %1348, %v537_v5   ;;  %vm837_vm9 = vcmask 752640   ;;  %vm886_vm10 = vcmask 744448   ;;  %vm935_vm11 = vcmask 736256   ;;  %vm1164_vm12 = vcmask 257024  }
  0x17   : > { %s1283_s22 = smul.u32 12, %s300_s21  ;;  %s1440_s21 = smov 91  }
  0x18   : > { %1346 = vset.pattern.permute.xlu1 %v1426_v4 }
  0x19   : > { %s1558_s10 = scalar_lea.vmem %s2040_s0, %s1283_s22  ;;  %614 = vperm.xlu1 %1346, %v537_v5   ;;  %1350 = vset.pattern.permute.xlu0 %v1428_v11  ;;  %s1441_s22 = smov 90  }
  0x1a   : > { %v307_v6 = vld [vmem:[%s1558_s10 + $0x8] sm:$0xf]  ;;  %v1562_v7 = vld [vmem:[%s1558_s10] sm:$0xff]  ;;  %757 = vperm.xlu0 %1350, %v1547_v2  }
  0x1b   : > { %1263 = vmatprep.subr.msk.mxu1 %vm330_vm1, %v307_v6  ;;  %v1569_v10 = vcombine.high %v1562_v7, %v1562_v7 }
  0x1c   : > { %1264 = vmatpush3.msk.msra.mxu1 %vm330_vm1, %v307_v6 }
  0x1d   : > { %1245 = vmatprep.subr.msk.mxu0 %vm330_vm1, %v1569_v10  ;;  %1266 = vmatmul.mubr.msk.f32.vlgmr.msra.gmra.mrb[0].mxu1 %vm323_vm0, %v305_v8 }
  0x1e   : > { %1246 = vmatpush1.msk.msra.mxu0 %vm330_vm1, %v1562_v7  ;;  %1057 = vmatprep.mubr.f32.mxu1 %v1424_v1 }
  0x1f   : > { %1247 = vmatmul.mubr.msk.f32.vlgmr.msra.gmra.mrb[0].mxu0 %vm323_vm0, %v304_v0  ;;  %1347 = vset.pattern.permute.xlu1 %v1427_v9 }
  0x20   : > { %407 = vmatprep.mubr.f32.mxu0 %v1424_v1  ;;  %659 = vperm.xlu1 %1347, %v1547_v2  }
  0x21   : > { %1353 = vset.pattern.permute.xlu0 %v1429_v12 }
  0x22   : > { %810 = vperm.xlu0 %1353, %v537_v5  }
  0x23   : > { %1248 = vmatmul.mubr.msk.f32.gmra.mrb[2].mxu0 %vm323_vm0, %v305_v8 }
  0x24   : > { %1349 = vset.pattern.permute.xlu1 %v1430_v13  ;;  %1272 = vmatprep.mubr.msk.f32.mxu0 %vm1443_vm2, %v1424_v1 }
  0x25   : > { %708 = vperm.xlu1 %1349, %v1547_v2  }
  0x26   : > { %1355 = vset.pattern.permute.xlu0 %v1431_v14 }
  0x27   : > { %904 = vperm.xlu0 %1355, %v1547_v2  }
  0x29   : > { %712 = vperm.xlu1 %1349, %v537_v5  }
  0x2b   : > { %1356 = vset.pattern.permute.xlu0 %v1432_v16 }
  0x2c   : > { %312 = vperm.xlu0 %1356, %v308_v15  }
  0x2d   : > { %1351 = vset.pattern.permute.xlu1 %v1428_v11 }
  0x2e   : > { %761 = vperm.xlu1 %1351, %v537_v5  }
  0x30   : > { %317 = vperm.xlu0 %1356, %v309_v17  }
  0x32   : > { %1352 = vset.pattern.permute.xlu1 %v1429_v12 }
  0x33   : > { %806 = vperm.xlu1 %1352, %v1547_v2  }
  0x34   : > { %545 = vperm.xlu0 %1356, %v537_v5  }
  0x37   : > { %1354 = vset.pattern.permute.xlu1 %v1433_v19 }
  0x38   : > { %855 = vperm.xlu1 %1354, %v1547_v2   ;;  %956 = vperm.xlu0 %1356, %v952_v18  }
  0x3c   : > { %859 = vperm.xlu1 %1354, %v537_v5  }
  0x40   : > { %1357 = vset.pattern.permute.xlu1 %v1431_v14 }
  0x41   : > { %908 = vperm.xlu1 %1357, %v537_v5  }
  0x45   : > { %1358 = vset.pattern.permute.xlu1 %v1432_v16 }
  0x46   : > { %540 = vperm.xlu1 %1358, %v1547_v2  }
  0x4a   : > { %961 = vperm.xlu1 %1358, %v953_v20  }
  0x8f   : > { %v1597_v21 = vpop.permute.xlu1 %561  ;;  %v1605_v25 = vpop.permute.xlu0 %610 }
  0x93   : > { %v1599_v22 = vpop.permute.xlu1 %565 }
  0x94   : > { %v1609_v27 = vpop.permute.xlu0 %663 }
  0x98   : > { %v1601_v23 = vpop.permute.xlu1 %614 }
  0x99   : > { %v1613_v29 = vpop.permute.xlu0 %757 }
  0x9f   : > { %v1603_v24 = vpop.permute.xlu1 %659 }
  0xa1   : > { %v1617_v31 = vpop.permute.xlu0 %810 }
  0xa4   : > { %v1607_v26 = vpop.permute.xlu1 %708 }
  0xa6   : > { %v1621_v33 = vpop.permute.xlu0 %904 }
  0xa8   : > { %v1611_v28 = vpop.permute.xlu1 %712 }
  0xab   : > { %v313_v36 = vpop.permute.xlu0 %312 }
  0xad   : > { %v1615_v30 = vpop.permute.xlu1 %761 }
  0xaf   : > { %v1627_v40 = vpop.permute.xlu0 %317 }
  0xb2   : > { %v1619_v32 = vpop.permute.xlu1 %806 }
  0xb7   : > { %v1623_v34 = vpop.permute.xlu1 %855 }
  0xbb   : > { %v1625_v38 = vpop.permute.xlu1 %859 }
  0xc0   : > { %v1633_v48 = vpop.permute.xlu1 %908 }
  0xc5   : > { %v1642_v2 = vpop.permute.xlu1 %540 }
  0xf0   : > { %v1267_v41 = vpop.f32.mrb[0].mxu1 }
  0xf1   : > { %v486_v43 = vadd.f32 %v1267_v41, %v1627_v40  ;;  %v480_v44 = vpop.f32.mrb[1].mxu1 }
  0xf2   : > { %v403_v46 = vpop.f32.mrb[0].mxu0  ;;  %v481_v35 = vadd.f32 %v480_v44, %v313_v36 }
  0xf3   : > { %v494_v49 = vmax.f32 %v486_v43, 0.0  ;;  %v404_v51 = vadd.f32 %v403_v46, %v313_v36  ;;  %v405_v52 = vpop.f32.mrb[1].mxu0 }
  0xf4   : > { %v406_v53 = vadd.f32 %v405_v52, %v313_v36  ;;  %v491_v41 = vmax.f32 %v481_v35, 0.0 }
  0xf5   : > { %v500_v54 = vmin.f32 %v494_v49, 6.0  ;;  %v489_v55 = vmax.f32 %v404_v51, 0.0 }
  0xf6   : > { %v490_v57 = vmax.f32 %v406_v53, 0.0  ;;  %v409_v59 = vpop.f32.mrb[2].mxu0  ;;  %v497_v44 = vmin.f32 %v491_v41, 6.0 }
  0xf7   : > { %v1637_v60 = vmul.f32 %v514_v50, %v500_v54  ;;  %v495_v61 = vmin.f32 %v489_v55, 6.0  ;;  %v410_v62 = vadd.f32 %v409_v59, %v1627_v40  ;;  %v1640_v63 = vpop.f32.mrb[3].mxu0 }
  0xf8   : > { %v496_v0 = vmin.f32 %v490_v57, 6.0  ;;  %v1705_v46 = vmul.f32 %v514_v50, %v497_v44  ;;  %v412_v55 = vadd.f32 %v1640_v63, %v1627_v40 }
  0xf9   : > { %v1644_v3 = vmul.f32 %v506_v56, %v495_v61  ;;  %v492_v4 = vmax.f32 %v410_v62, 0.0  ;;  %v573_v6 = vmul.f32 %v1599_v22, %v1637_v60  ;;  %v622_v14 = vmul.f32 %v1601_v23, %v1637_v60 }
  0xfa   : > { %v1647_v5 = vmul.f32 %v1635_v58, %v496_v0  ;;  %v671_v16 = vmul.f32 %v1609_v27, %v1637_v60  ;;  %v720_v18 = vmul.f32 %v1611_v28, %v1637_v60  ;;  %v769_v37 = vmul.f32 %v1615_v30, %v1637_v60 }
  0xfb   : > { %v498_v8 = vmin.f32 %v492_v4, 6.0  ;;  %v1653_v9 = vmul.f32 %v1642_v2, %v1644_v3  ;;  %v568_v11 = vmul.f32 %v1597_v21, %v1644_v3  ;;  %590 = vrot.lane.b32.xlu1 %v573_v6, %s1434_s12  ;;  %v617_v15 = vmul.f32 %v1605_v25, %v1644_v3 }
  0xfc   : > { %v1659_v12 = vmul.f32 %v1642_v2, %v1647_v5  ;;  %v666_v17 = vmul.f32 %v1603_v24, %v1644_v3  ;;  %v715_v19 = vmul.f32 %v1607_v26, %v1644_v3  ;;  %v764_v39 = vmul.f32 %v1613_v29, %v1644_v3 }
  0xfd   : > { %v1662_v13 = vmul.f32 %v506_v56, %v498_v8  ;;  %580 = vrot.lane.b32.xlu0 %v568_v11, %s1434_s12  ;;  %v818_v42 = vmul.f32 %v1617_v31, %v1637_v60  ;;  %v813_v43 = vmul.f32 %v1619_v32, %v1644_v3  ;;  %v867_v36 = vmul.f32 %v1625_v38, %v1637_v60 }
  0xfe   : > { %v862_v45 = vmul.f32 %v1623_v34, %v1644_v3  ;;  %v916_v47 = vmul.f32 %v1633_v48, %v1637_v60  ;;  %v618_v49 = vmul.f32 %v1605_v25, %v1647_v5  ;;  %v570_v51 = vmul.f32 %v1597_v21, %v1705_v46 }
  0xff   : > { %639 = vrot.lane.b32.xlu1 %v622_v14, %s1435_s13  ;;  %v1683_v20 = vmul.f32 %v1633_v48, %v1662_v13  ;;  %v667_v52 = vmul.f32 %v1603_v24, %v1647_v5  ;;  %v619_v50 = vmul.f32 %v1605_v25, %v1705_v46  ;;  %v716_v53 = vmul.f32 %v1607_v26, %v1647_v5 }
 0x100   : > { %v668_v54 = vmul.f32 %v1603_v24, %v1705_v46  ;;  %v765_v56 = vmul.f32 %v1613_v29, %v1647_v5  ;;  %v717_v25 = vmul.f32 %v1607_v26, %v1705_v46  ;;  %v493_v57 = vmax.f32 %v412_v55, 0.0 }
 0x101   : > { %629 = vrot.lane.b32.xlu0 %v617_v15, %s1435_s13  ;;  %v814_v59 = vmul.f32 %v1619_v32, %v1647_v5  ;;  %v766_v24 = vmul.f32 %v1613_v29, %v1705_v46  ;;  %v863_v61 = vmul.f32 %v1623_v34, %v1647_v5  ;;  %v815_v26 = vmul.f32 %v1619_v32, %v1705_v46 }
 0x102   : > { %v499_v40 = vmin.f32 %v493_v57, 6.0  ;;  %v912_v63 = vmul.f32 %v1621_v33, %v1647_v5  ;;  %v864_v29 = vmul.f32 %v1623_v34, %v1705_v46  ;;  %v913_v32 = vmul.f32 %v1621_v33, %v1705_v46 }
 0x103   : > { %688 = vrot.lane.b32.xlu1 %v671_v16, %s1436_s17  ;;  %v569_v34 = vmul.f32 %v1597_v21, %v1647_v5  ;;  %v1442_v6 = vmov 0.0|0.0   ;;  %v571_v8 = vmul.f32 %v1599_v22, %v1662_v13  ;;  %v620_v21 = vmul.f32 %v1601_v23, %v1662_v13 }
 0x104   : > { %v1748_v62 = vmul.f32 %v1635_v58, %v499_v40  ;;  %1279 = vmatprep.subr.bf16.mxu0 %v1442_v6  ;;  %v911_v16 = vmul.f32 %v1621_v33, %v1644_v3  ;;  %v1823_v33 = vpop.permute.xlu0 %545 }
 0x105   : > { %678 = vrot.lane.b32.xlu0 %v666_v17, %s1436_s17 }
 0x106   : > { %v572_v0 = vmul.f32 %v1599_v22, %v1748_v62  ;;  %v621_v58 = vmul.f32 %v1601_v23, %v1748_v62  ;;  %v670_v4 = vmul.f32 %v1609_v27, %v1748_v62  ;;  %v719_v11 = vmul.f32 %v1611_v28, %v1748_v62 }
 0x107   : > { %737 = vrot.lane.b32.xlu1 %v720_v18, %s1437_s18  ;;  %v768_v1 = vmul.f32 %v1615_v30, %v1748_v62  ;;  %v669_v22 = vmul.f32 %v1609_v27, %v1662_v13  ;;  %v817_v5 = vmul.f32 %v1617_v31, %v1748_v62  ;;  %v718_v23 = vmul.f32 %v1611_v28, %v1662_v13 }
 0x108   : > { %v866_v14 = vmul.f32 %v1625_v38, %v1748_v62  ;;  %v767_v27 = vmul.f32 %v1615_v30, %v1662_v13  ;;  %v915_v15 = vmul.f32 %v1633_v48, %v1748_v62  ;;  %v816_v28 = vmul.f32 %v1617_v31, %v1662_v13  ;;  %v983_v48 = vld [vmem:[%s2047_s7] sm:$0xf]  ;;  %v1141_v31 = vld [vmem:[%s1558_s10 + $0x8] sm:$0xf]  ;;  %v1827_v3 = vpop.permute.xlu0 %956 }
 0x109   : > { %727 = vrot.lane.b32.xlu0 %v715_v19, %s1437_s18  ;;  %v865_v30 = vmul.f32 %v1625_v38, %v1662_v13  ;;  %v1825_v38 = vpop.permute.xlu1 %961 }
 0x10b   : > { %786 = vrot.lane.b32.xlu1 %v769_v37, %s1438_s19 }
 0x10d   : > { %776 = vrot.lane.b32.xlu0 %v764_v39, %s1438_s19 }
 0x10f   : > { %835 = vrot.lane.b32.xlu1 %v818_v42, %s1439_s20 }
 0x111   : > { %825 = vrot.lane.b32.xlu0 %v813_v43, %s1439_s20 }
 0x113   : > { %884 = vrot.lane.b32.xlu1 %v867_v36, %s1440_s21 }
 0x115   : > { %874 = vrot.lane.b32.xlu0 %v862_v45, %s1440_s21 }
 0x117   : > { %933 = vrot.lane.b32.xlu1 %v916_v47, %s1441_s22 }
 0x119   : > { %631 = vrot.lane.b32.xlu0 %v618_v49, %s1435_s13 }
 0x11b   : > { %584 = vrot.lane.b32.xlu1 %v570_v51, %s1434_s12 }
 0x11d   : > { %680 = vrot.lane.b32.xlu0 %v667_v52, %s1436_s17 }
 0x11f   : > { %633 = vrot.lane.b32.xlu1 %v619_v50, %s1435_s13 }
 0x121   : > { %729 = vrot.lane.b32.xlu0 %v716_v53, %s1437_s18  ;;  %v553_v53 = vmul.f32 %v1823_v33, %v1637_v60 }
 0x123   : > { %682 = vrot.lane.b32.xlu1 %v668_v54, %s1436_s17 }
 0x125   : > { %778 = vrot.lane.b32.xlu0 %v765_v56, %s1438_s19 }
 0x127   : > { %731 = vrot.lane.b32.xlu1 %v717_v25, %s1437_s18 }
 0x129   : > { %827 = vrot.lane.b32.xlu0 %v814_v59, %s1439_s20  ;;  %v550_v59 = vmul.f32 %v1642_v2, %v1705_v46 }
 0x12b   : > { %780 = vrot.lane.b32.xlu1 %v766_v24, %s1438_s19 }
 0x12d   : > { %876 = vrot.lane.b32.xlu0 %v863_v61, %s1440_s21 }
 0x12f   : > { %829 = vrot.lane.b32.xlu1 %v815_v26, %s1439_s20 }
 0x131   : > { %925 = vrot.lane.b32.xlu0 %v912_v63, %s1441_s22 }
 0x133   : > { %878 = vrot.lane.b32.xlu1 %v864_v29, %s1440_s21 }
 0x135   : > { %588 = vrot.lane.b32.xlu0 %v572_v0, %s1434_s12 }
 0x137   : > { %927 = vrot.lane.b32.xlu1 %v913_v32, %s1441_s22 }
 0x139   : > { %637 = vrot.lane.b32.xlu0 %v621_v58, %s1435_s13 }
 0x13b   : > { %582 = vrot.lane.b32.xlu1 %v569_v34, %s1434_s12 }
 0x13d   : > { %686 = vrot.lane.b32.xlu0 %v670_v4, %s1436_s17 }
 0x13f   : > { %586 = vrot.lane.b32.xlu1 %v571_v8, %s1434_s12  ;;  %s1282_s12 = smul.u32 12, %s296_s26 }
 0x141   : > { %735 = vrot.lane.b32.xlu0 %v719_v11, %s1437_s18 }
 0x143   : > { %635 = vrot.lane.b32.xlu1 %v620_v21, %s1435_s13  ;;  %s298_s13 = scalar_lea.vmem [#allocation3], %s1282_s12 }
 0x145   : > { %784 = vrot.lane.b32.xlu0 %v768_v1, %s1438_s19  ;;  %v552_v1 = vmul.f32 %v1823_v33, %v1748_v62 }
 0x147   : > { %684 = vrot.lane.b32.xlu1 %v669_v22, %s1436_s17  ;;  %s1284_s17 = smul.u32 192, %s1511_s9  ;;  %s1444_s9 = smov [#allocation3]  }
 0x148   : > { %s1364_s24 = sshll.u32 %s1444_s9, 4  ;;  %s1365_s24 = int_to_ptr.vmem [resolvable:$false] %s1364_s24 }
 0x149   : > { %833 = vrot.lane.b32.xlu0 %v817_v5, %s1439_s20  ;;  %s1366_s10 = scalar_lea.vmem %s1365_s24, 384 }
 0x14b   : > { %733 = vrot.lane.b32.xlu1 %v718_v23, %s1437_s18 }
 0x14d   : > { %882 = vrot.lane.b32.xlu0 %v866_v14, %s1440_s21 }
 0x14f   : > { %782 = vrot.lane.b32.xlu1 %v767_v27, %s1438_s19 }
 0x151   : > { %931 = vrot.lane.b32.xlu0 %v915_v15, %s1441_s22 }
 0x153   : > { %831 = vrot.lane.b32.xlu1 %v816_v28, %s1439_s20 }
 0x155   : > { %923 = vrot.lane.b32.xlu0 %v911_v16, %s1441_s22 }
 0x157   : > { %880 = vrot.lane.b32.xlu1 %v865_v30, %s1440_s21  ;;  %s1996_s21 = scalar_lea.hbm %s2048_s8, %s1284_s17 }
 0x159   : > { %986 = vperm.xlu0 %1356, %v983_v48  }
 0x15b   : > { %929 = vrot.lane.b32.xlu1 %v1683_v20, %s1441_s22  ;;  %s1167_s22 = scalar_lea.sflag [#allocation4], %s296_s26 }
 0x15d   : > { %1147 = vrot.lane.b32.xlu0 %v1569_v10, %s1437_s18 }
 0x15f   : > { %1145 = vrot.lane.b32.xlu1 %v1562_v7, %s1437_s18 }
 0x163   : > { %1149 = vrot.lane.b32.xlu1 %v1141_v31, %s1437_s18  ;;  %s1181_s18 = sshll.u32 %s298_s13, 4  ;;  %s1998_s18 = int_to_ptr.vmem [resolvable:$true] %s1181_s18 }
 0x164   : > { %s1360_s23 = scalar_lea.vmem %s1998_s18, 192  ;;  %p1367_p0 = scmp.lt.s32.totalorder %s1998_s18, %s1365_s24 }
 0x165   : > { %p1361_p11 = scmp.ne.s32.totalorder %s1998_s18, %s1360_s23  ;;  %p1368_p1 = scmp.lt.s32.totalorder %s1366_s10, %s1360_s23 }
 0x167   : > { %p1362_p12 = pnand %p1361_p11, %p1528_p5  ;;  %p1369_p2 = por %p1368_p1, %p1367_p0 }
 0x169   : > { %p1363_p13 = pneg %p1362_p12 }
 0x16b   : > { %p1370_p3 = pnand %p1369_p2, %p1363_p13 }
 0x16d   : > { %v591_v17 = vpop.permute.xlu1 %590 }
 0x16e   : > { %v608_v55 = vadd.f32 %v591_v17, %v553_v53 }
 0x16f   : > { %v1829_v18 = vpop.permute.xlu0 %580 }
 0x171   : > { %v640_v19 = vpop.permute.xlu1 %639 }
 0x172   : > { %v657_v25 = vadd.f32 %v640_v19, %v608_v55 }
 0x173   : > { %v1831_v20 = vpop.permute.xlu0 %629 }
 0x175   : > { %v1833_v35 = vpop.permute.xlu1 %688 }
 0x176   : > { %v706_v24 = vadd.f32 %v1833_v35, %v657_v25 }
 0x177   : > { %v1835_v10 = vpop.permute.xlu0 %678 }
 0x179   : > { %v1837_v7 = vpop.permute.xlu1 %737 }
 0x17a   : > { %v755_v61 = vadd.f32 %v1837_v7, %v706_v24 }
 0x17b   : > { %v1839_v37 = vpop.permute.xlu0 %727 }
 0x17d   : > { %v1841_v39 = vpop.permute.xlu1 %786 }
 0x17e   : > { %v804_v60 = vadd.f32 %v1841_v39, %v755_v61 }
 0x17f   : > { %v1843_v41 = vpop.permute.xlu0 %776 }
 0x181   : > { %v1845_v42 = vpop.permute.xlu1 %835 }
 0x182   : > { %v853_v32 = vadd.f32 %v1845_v42, %v804_v60 }
 0x183   : > { %v1847_v43 = vpop.permute.xlu0 %825 }
 0x185   : > { %v1849_v36 = vpop.permute.xlu1 %884 }
 0x186   : > { %v902_v2 = vadd.f32 %v1849_v36, %v853_v32 }
 0x187   : > { %v1851_v44 = vpop.permute.xlu0 %874 }
 0x189   : > { %v1853_v45 = vpop.permute.xlu1 %933 }
 0x18a   : > { %v951_v6 = vadd.f32 %v1853_v45, %v902_v2 }
 0x18b   : > { %v632_v47 = vpop.permute.xlu0 %631 }
 0x18c   : > { %v969_v23 = vadd.f32 %v1825_v38, %v951_v6  ;;  %v642_v24 = vsel %vm641_vm4, %v1831_v20, %v632_v47 }
 0x18d   : > { %v585_v49 = vpop.permute.xlu1 %584 }
 0x18e   : > { %v605_v26 = vadd.f32 %v585_v49, %v550_v59  ;;  %v975_v30 = vmax.f32 %v969_v23, 0.0 }
 0x18f   : > { %v1855_v51 = vpop.permute.xlu0 %680 }
 0x190   : > { %v981_v60 = vmin.f32 %v975_v30, 6.0  ;;  %v691_v20 = vsel %vm690_vm5, %v1835_v10, %v1855_v51 }
 0x191   : > { %v634_v52 = vpop.permute.xlu1 %633 }
 0x192   : > { %v654_v29 = vadd.f32 %v634_v52, %v605_v26 }
 0x193   : > { %v1857_v50 = vpop.permute.xlu0 %729 }
 0x195   : > { %v683_v54 = vpop.permute.xlu1 %682 }
 0x196   : > { %v703_v58 = vadd.f32 %v683_v54, %v654_v29  ;;  %v643_v29 = vsel %vm641_vm4, %v632_v47, %v634_v52  ;;  %v740_v52 = vsel %vm739_vm6, %v1839_v37, %v1857_v50 }
 0x197   : > { %v1861_v56 = vpop.permute.xlu0 %778 }
 0x198   : > { %v789_v37 = vsel %vm788_vm7, %v1843_v41, %v1861_v56 }
 0x199   : > { %v1863_v57 = vpop.permute.xlu1 %731 }
 0x19a   : > { %v752_v46 = vadd.f32 %v1863_v57, %v703_v58 }
 0x19b   : > { %v1868_v40 = vpop.permute.xlu0 %827 }
 0x19c   : > { %v838_v23 = vsel %vm837_vm9, %v1847_v43, %v1868_v40 }
 0x19d   : > { %v1871_v63 = vpop.permute.xlu1 %780 }
 0x19e   : > { %v801_v8 = vadd.f32 %v1871_v63, %v752_v46 }
 0x19f   : > { %v1874_v0 = vpop.permute.xlu0 %876 }
 0x1a1   : > { %v1877_v34 = vpop.permute.xlu1 %829 }
 0x1a2   : > { %v850_v21 = vadd.f32 %v1877_v34, %v801_v8  ;;  %v741_v8 = vsel %vm739_vm6, %v1857_v50, %v1863_v57  ;;  %v790_v50 = vsel %vm788_vm7, %v1861_v56, %v1871_v63  ;;  %v887_v56 = vsel %vm886_vm10, %v1851_v44, %v1874_v0 }
 0x1a3   : > { %v1881_v4 = vpop.permute.xlu0 %925 }
 0x1a5   : > { %v1885_v11 = vpop.permute.xlu1 %878 }
 0x1a6   : > { %v899_v14 = vadd.f32 %v1885_v11, %v850_v21  ;;  %v888_v63 = vsel %vm886_vm10, %v1874_v0, %v1885_v11 }
 0x1a7   : > { %v1890_v22 = vpop.permute.xlu0 %588 }
 0x1a8   : > { %v596_v5 = vsel %vm592_vm3, %v1890_v22, %v591_v17 }
 0x1a9   : > { %v607_v27 = vadd.f32 %v596_v5, %v552_v1  ;;  %v1896_v15 = vpop.permute.xlu1 %927 }
 0x1aa   : > { %v948_v28 = vadd.f32 %v1896_v15, %v899_v14  ;;  %v839_v14 = vsel %vm837_vm9, %v1868_v40, %v1877_v34  ;;  %v937_v40 = vsel %vm935_vm11, %v1881_v4, %v1896_v15 }
 0x1ab   : > { %v1899_v16 = vpop.permute.xlu0 %637 }
 0x1ac   : > { %v645_v62 = vsel %vm641_vm4, %v1899_v16, %v640_v19  ;;  %v966_v48 = vadd.f32 %v1827_v3, %v948_v28 }
 0x1ad   : > { %v656_v31 = vadd.f32 %v645_v62, %v607_v27  ;;  %v583_v17 = vpop.permute.xlu1 %582 }
 0x1ae   : > { %v972_v53 = vmax.f32 %v966_v48, 0.0  ;;  %v593_v55 = vsel %vm592_vm3, %v1829_v18, %v583_v17  ;;  %v594_v25 = vsel %vm592_vm3, %v583_v17, %v585_v49 }
 0x1af   : > { %v1907_v59 = vpop.permute.xlu0 %686  ;;  %v603_v61 = vadd.f32 %v593_v55, %v1653_v9  ;;  %v604_v19 = vadd.f32 %v594_v25, %v1659_v12  ;;  %v692_v9 = vsel %vm690_vm5, %v1855_v51, %v683_v54  ;;  %v1933_v51 = vld [vmem:[%s2046_s6] sm:$0xf] }
 0x1b0   : > { %v694_v26 = vsel %vm690_vm5, %v1907_v59, %v1833_v35  ;;  %v978_v32 = vmin.f32 %v972_v53, 6.0  ;;  %v551_v53 = vmul.f32 %v1823_v33, %v1662_v13 }
 0x1b1   : > { %v705_v18 = vadd.f32 %v694_v26, %v656_v31  ;;  %v652_v49 = vadd.f32 %v642_v24, %v603_v61  ;;  %v653_v58 = vadd.f32 %v643_v29, %v604_v19  ;;  %v587_v2 = vpop.permute.xlu1 %586 }
 0x1b2   : > { %v1280_v12 = vpack.c.bf16 %v981_v60, %v978_v32  ;;  %v595_v44 = vsel %vm592_vm3, %v587_v2, %v1890_v22 }
 0x1b3   : > { %v736_v46 = vpop.permute.xlu0 %735  ;;  %v701_v35 = vadd.f32 %v691_v20, %v652_v49  ;;  %v702_v6 = vadd.f32 %v692_v9, %v653_v58  ;;  %v606_v25 = vadd.f32 %v595_v44, %v551_v53 }
 0x1b4   : > { %v743_v47 = vsel %vm739_vm6, %v736_v46, %v1837_v7  ;;  %1281 = vmatpush3.bf16.msra.mxu0 %v1280_v12 }
 0x1b5   : > { %v754_v10 = vadd.f32 %v743_v47, %v705_v18  ;;  %v750_v54 = vadd.f32 %v740_v52, %v701_v35  ;;  %v751_v21 = vadd.f32 %v741_v8, %v702_v6  ;;  %v636_v7 = vpop.permute.xlu1 %635 }
 0x1b6   : > { %v644_v55 = vsel %vm641_vm4, %v636_v7, %v1899_v16 }
 0x1b7   : > { %v785_v57 = vpop.permute.xlu0 %784  ;;  %v800_v1 = vadd.f32 %v790_v50, %v751_v21  ;;  %1273 = vmatmul.mubr.msk.f32.vlgmr.msra.gmra.mrb[4].mxu0 %vm989_vm8, %v1933_v51  ;;  %v799_v5 = vadd.f32 %v789_v37, %v750_v54  ;;  %v655_v26 = vadd.f32 %v644_v55, %v606_v25 }
 0x1b8   : > { %v792_v43 = vsel %vm788_vm7, %v785_v57, %v1841_v39 }
 0x1b9   : > { %v849_v41 = vadd.f32 %v839_v14, %v800_v1  ;;  %v685_v27 = vpop.permute.xlu1 %684  ;;  %v848_v28 = vadd.f32 %v838_v23, %v799_v5  ;;  %v803_v17 = vadd.f32 %v792_v43, %v754_v10 }
 0x1bb   : > { %v834_v62 = vpop.permute.xlu0 %833  ;;  %v897_v30 = vadd.f32 %v887_v56, %v848_v28  ;;  %v898_v48 = vadd.f32 %v888_v63, %v849_v41 }
 0x1bc   : > { %v841_v34 = vsel %vm837_vm9, %v834_v62, %v1845_v42  ;;  %v693_v42 = vsel %vm690_vm5, %v685_v27, %v1907_v59 }
 0x1bd   : > { %v734_v31 = vpop.permute.xlu1 %733  ;;  %v947_v11 = vadd.f32 %v937_v40, %v898_v48  ;;  %v852_v15 = vadd.f32 %v841_v34, %v803_v17  ;;  %v704_v60 = vadd.f32 %v693_v42, %v655_v26 }
 0x1be   : > { %v742_v33 = vsel %vm739_vm6, %v734_v31, %v736_v46 }
 0x1bf   : > { %v883_v0 = vpop.permute.xlu0 %882  ;;  %v965_v19 = vadd.f32 %v1827_v3, %v947_v11  ;;  %v753_v59 = vadd.f32 %v742_v33, %v704_v60 }
 0x1c0   : > { %v890_v39 = vsel %vm886_vm10, %v883_v0, %v1849_v36 }
 0x1c1   : > { %v783_v24 = vpop.permute.xlu1 %782  ;;  %v901_v61 = vadd.f32 %v890_v39, %v852_v15  ;;  %v971_v49 = vmax.f32 %v965_v19, 0.0 }
 0x1c2   : > { %v791_v16 = vsel %vm788_vm7, %v783_v24, %v785_v57 }
 0x1c3   : > { %v932_v22 = vpop.permute.xlu0 %931  ;;  %v802_v9 = vadd.f32 %v791_v16, %v753_v59  ;;  %v977_v6 = vmin.f32 %v971_v49, 6.0 }
 0x1c4   : > { %v939_v13 = vsel %vm935_vm11, %v932_v22, %v1853_v45 }
 0x1c5   : > { %v950_v36 = vadd.f32 %v939_v13, %v901_v61  ;;  %v832_v29 = vpop.permute.xlu1 %831 }
 0x1c6   : > { %v840_v20 = vsel %vm837_vm9, %v832_v29, %v834_v62 }
 0x1c7   : > { %v968_v32 = vadd.f32 %v1825_v38, %v950_v36  ;;  %v924_v18 = vpop.permute.xlu0 %923  ;;  %v851_v47 = vadd.f32 %v840_v20, %v802_v9 }
 0x1c8   : > { %v936_v58 = vsel %vm935_vm11, %v924_v18, %v1881_v4 }
 0x1c9   : > { %v974_v2 = vmax.f32 %v968_v32, 0.0  ;;  %v946_v45 = vadd.f32 %v936_v58, %v897_v30  ;;  %v881_v12 = vpop.permute.xlu1 %880 }
 0x1ca   : > { %v889_v35 = vsel %vm886_vm10, %v881_v12, %v883_v0 }
 0x1cb   : > { %v980_v46 = vmin.f32 %v974_v2, 6.0  ;;  %v964_v8 = vadd.f32 %v1827_v3, %v946_v45  ;;  %v900_v10 = vadd.f32 %v889_v35, %v851_v47 }
 0x1cd   : > { %v1275_v52 = vpack.c.bf16 %v980_v46, %v977_v6  ;;  %v930_v54 = vpop.permute.xlu1 %929  ;;  %v970_v7 = vmax.f32 %v964_v8, 0.0 }
 0x1ce   : > { %v938_v21 = vsel %vm935_vm11, %v930_v54, %v932_v22 }
 0x1cf   : > { %1276 = vmatprep.subr.bf16.mxu1 %v1275_v52  ;;  %v949_v4 = vadd.f32 %v938_v21, %v900_v10  ;;  %v976_v57 = vmin.f32 %v970_v7, 6.0 }
 0x1d1   : > { %v967_v37 = vadd.f32 %v1825_v38, %v949_v4  ;;  %v1146_v23 = vpop.permute.xlu1 %1145 }
 0x1d3   : > { %v973_v50 = vmax.f32 %v967_v37, 0.0 }
 0x1d5   : > { %v979_v1 = vmin.f32 %v973_v50, 6.0  ;;  %v1150_v56 = vpop.permute.xlu1 %1149 }
 0x1d7   : > { %v1277_v5 = vpack.c.bf16 %v979_v1, %v976_v57 }
 0x1d8   : > { %v987_v3 = vpop.permute.xlu0 %986 }
 0x1d9   : > { %1278 = vmatpush1.bf16.msra.mxu1 %v1277_v5 }
 0x1dc   : > { %1252 = vmatmul.mubr.msk.f32.vlgmr.msra.gmra.mrb[2].mxu1 %vm989_vm8, %v1933_v51  ;;  %v1148_v40 = vpop.permute.xlu0 %1147 }
 0x1dd   : > { %v1152_v44 = vsel %vm739_vm6, %v1148_v40, %v1150_v56  ;;  %v1151_v0 = vsel %vm739_vm6, %v1146_v23, %v1148_v40 }
 0x28a   : > { %v1130_v14 = vpop.f32.mrb[4].mxu0 }
 0x28b   : > { %v1131_v41 = vadd.f32 %v1130_v14, %v987_v3  ;;  %v1274_v27 = vpop.f32.mrb[5].mxu0 }
 0x28d   : > { %v1136_v28 = vmax.f32 %v1131_v41, 0.0 }
 0x28f   : > { %v1139_v63 = vmin.f32 %v1136_v28, 6.0 }
 0x291   : > { %v1158_v38 = vadd.f32 %v1150_v56, %v1139_v63 }
 0x293   : > { %1165 = vst.msk [vmem:[%s298_s13 + $0x8] sm:$0xf] %vm1164_vm12, %v1158_v38 }
 0x2af   : > { %v1059_v62 = vpop.f32.mrb[2].mxu1 }
 0x2b0   : > { %v1060_v43 = vadd.f32 %v1059_v62, %v987_v3  ;;  %v1061_v30 = vpop.f32.mrb[3].mxu1 }
 0x2b1   : > { %v1062_v51 = vadd.f32 %v1061_v30, %v987_v3 }
 0x2b2   : > { %v1134_v48 = vmax.f32 %v1060_v43, 0.0 }
 0x2b3   : > { %v1135_v34 = vmax.f32 %v1062_v51, 0.0 }
 0x2b4   : > { %v1137_v31 = vmin.f32 %v1134_v48, 6.0 }
 0x2b5   : > { %v1138_v17 = vmin.f32 %v1135_v34, 6.0 }
 0x2b6   : > { %v1156_v11 = vadd.f32 %v1151_v0, %v1137_v31 }
 0x2b7   : > { %v1157_v53 = vadd.f32 %v1152_v44, %v1138_v17 }
 0x2b9   : > { %v1161_v39 = vcombine.low %v1156_v11, %v1157_v53 }
 0x2bb   : > { %1163 = vst [vmem:[%s298_s13] sm:$0xff] %v1161_v39 }
 0x2bc   : > { %1373 = shalt.err (!%p1370_p3)
}
 0x2bd   : > { %s1374_s25 = scalar_lea.hbm %s1996_s21, 192  ;;  %s1378_s13 = scalar_lea.hbm %s2048_s8, 384 }
 0x2be   : > { %p1375_p4 = scmp.ne.s32.totalorder %s1996_s21, %s1374_s25  ;;  %p1379_p9 = scmp.lt.u32.totalorder %s1996_s21, %s2048_s8 }
 0x2bf   : > { %p1380_p10 = scmp.lt.u32.totalorder %s1378_s13, %s1374_s25  ;;  %p1382_p12 = scmp.lt.u32.totalorder %s1374_s25, %s1996_s21 }
 0x2c0   : > { %p1376_p7 = pnand %p1375_p4, %p1528_p5 }
 0x2c1   : > { %p1381_p11 = por %p1380_p10, %p1379_p9 }
 0x2c2   : > { %p1377_p8 = pneg %p1376_p7 }
 0x2c3   : > { %p1383_p13 = por %p1382_p12, %p1381_p11 }
 0x2c5   : > { %p1384_p0 = pnand %p1383_p13, %p1377_p8 }
 0x2c7   : > { %1387 = shalt.err (!%p1384_p0)
}
 0x2c8   : > { %1285 = dma.vmem_to_hbm [thread:$0]  (%p1528_p5), %s1998_s18, 192, %s1996_s21, %s1167_s22  }
 0x2c9 PF: > { %p1291_p1 = scmp.ge.s32.totalorder %s1422_s30, 2  ;;  %s1193_s20 = sand.u32 1, %s1410_s27  }
 0x2ca   : > { %s1194_s23 = scalar_lea.sflag [#allocation4], %s1193_s20 }
 0x2cb   : > { %p1288_p2 = pnand %p1291_p1, %p1532_p6 }
 0x2cd   : > { %1405 = dma.done.wait (!%p1288_p2), %s1194_s23, 192  }
 0x2ce   : > { %1407 = vsyncadd (!%p1288_p2), %s1194_s23, 4294967104  ;;  %p18_p3 = scmp.ge.s32.totalorder %s1515_s11, 4   ;;  %s2051_s27 = smov %s1414_s28 }
 0x2cf   : > { %s2052_s28 = smov %s1418_s29  ;;  %s2053_s29 = smov %s1526_s14 }
 0x2d0   : > { %s2054_s30 = smov %s1515_s11  ;;  %20 = sbr.rel (!%p18_p3) target bundleno = 3 (0x3), region = 87 }
 0x2d7   :  { %1199 = vsyncpa [#allocation4], 1 }
 0x2d8   :  { %1201 = vsyncpa [#allocation4 + $0x1], 1 }

</bundles_post_ra>
